<compile_context>
chip_gen: v6e
topology: v6e:2x2x1
jax: 0.10.0
libtpu: 0.0.40
codegen_flags: <defaults>
</compile_context>

<pallas_src>
import functools

import jax
import jax.numpy as jnp
from jax.experimental import pallas as pl
from jax.experimental.pallas import tpu as pltpu


def _round_up(x, m):
    return ((x + m - 1) // m) * m


# ------------------------------ kernel 1: 1x1 conv (aspp_in) ------------------------------

def _conv1x1_kernel(x_ref, w_ref, b_ref, o_ref, *, act):
    # x_ref: (tm, Cin) bf16   w_ref: (Cin, Cout) bf16 (BN scale folded)   b_ref: (1, Cout) f32
    y = jnp.dot(x_ref[...], w_ref[...], preferred_element_type=jnp.float32) + b_ref[...]
    if act:
        y = jnp.maximum(y, 0.0)
    o_ref[...] = y.astype(o_ref.dtype)


def conv1x1_bias_act(x2d, w, bias, act, out_dtype=jnp.float32, tm=512):
    """1x1 conv as channel matmul + bias + optional ReLU. Handles any pixel count via padding."""
    M, Cin = x2d.shape
    Cout = w.shape[1]
    tm = min(tm, _round_up(M, 16))
    Mp = _round_up(M, tm)
    if Mp != M:
        x2d = jnp.pad(x2d, ((0, Mp - M), (0, 0)))
    out = pl.pallas_call(
        functools.partial(_conv1x1_kernel, act=act),
        out_shape=jax.ShapeDtypeStruct((Mp, Cout), out_dtype),
        grid=(Mp // tm,),
        in_specs=[
            pl.BlockSpec((tm, Cin), lambda i: (i, 0)),
            pl.BlockSpec((Cin, Cout), lambda i: (0, 0)),
            pl.BlockSpec((1, Cout), lambda i: (0, 0)),
        ],
        out_specs=pl.BlockSpec((tm, Cout), lambda i: (i, 0)),
        compiler_params=pltpu.CompilerParams(dimension_semantics=("parallel",)),
    )(x2d, w, bias)
    return out[:M] if Mp != M else out


# ------------------- kernel 2: pooled branch -> per-batch output bias -------------------

def _gave_pool_kernel(x_ref, wg_ref, wo_ref, o_ref):
    # ReLU -> global avg pool -> 1x1 conv (no bias) -> ReLU -> fold through w_out slice 0.
    C = wg_ref.shape[0]
    x = jnp.maximum(x_ref[0].astype(jnp.float32), 0.0)              # (H, W, C)
    m = jnp.mean(x.reshape(-1, C), axis=0, keepdims=True)           # (1, C)
    g = jnp.maximum(jnp.dot(m, wg_ref[...], preferred_element_type=jnp.float32), 0.0)
    gc = jnp.dot(g, wo_ref[...], preferred_element_type=jnp.float32)  # (1, Cout)
    o_ref[...] = gc.reshape(1, 1, -1)


def gave_pool_bias(x0, w_gave, wo_avg):
    """Returns gcontrib (N, 1, Cout) f32: the pooled branch already pushed through the
    (BN-folded) first slice of the output 1x1 conv, i.e. a per-batch bias term."""
    N, H, W, C = x0.shape
    Cout = wo_avg.shape[1]
    return pl.pallas_call(
        _gave_pool_kernel,
        out_shape=jax.ShapeDtypeStruct((N, 1, Cout), jnp.float32),
        grid=(N,),
        in_specs=[
            pl.BlockSpec((1, H, W, C), lambda n: (n, 0, 0, 0)),
            pl.BlockSpec((C, C), lambda n: (0, 0)),
            pl.BlockSpec((C, Cout), lambda n: (0, 0)),
        ],
        out_specs=pl.BlockSpec((1, 1, Cout), lambda n: (n, 0, 0)),
        compiler_params=pltpu.CompilerParams(dimension_semantics=("parallel",)),
    )(x0, w_gave, wo_avg)


# ------------- kernel 3: fused x1 + three dilated branches + output 1x1 conv -------------

def _aspp_fused_kernel(g_ref, xp_ref, w1_ref, b1_ref, wb_ref, bb_ref, wo_ref, bo_ref,
                       o_ref, *, H, W, dmax, dils):
    # g_ref  : (1, 1, Cout) f32   per-batch pooled-branch bias
    # xp_ref : (1, Hp, Wp, C) bf16  zero-padded x0 (pad = dmax)
    # w1_ref : (C, C) bf16          conv1x1 weight (BN scale folded)
    # b1_ref : (1, C) f32
    # wb_ref : (27, C, C) bf16      dilated 3x3 taps, branch-major / (ky*3+kx)-minor, BN folded
    # bb_ref : (3, C) f32
    # wo_ref : (4, C, Cout) bf16    output 1x1 conv slices [x1, b1, b2, b3], BN scale folded
    # bo_ref : (1, Cout) f32
    C = w1_ref.shape[0]
    HW = H * W
    f32 = jnp.float32
    bf16 = jnp.bfloat16

    # ---- x1 = ReLU(1x1 conv of x0) ; its contribution to the output conv ----
    xi = xp_ref[0, dmax:dmax + H, dmax:dmax + W, :].reshape(HW, C)            # bf16
    x1 = jnp.dot(xi, w1_ref[...], preferred_element_type=f32) + b1_ref[...]
    x1 = jnp.maximum(x1, 0.0)
    acc = jnp.dot(x1.astype(bf16), wo_ref[0], preferred_element_type=f32)     # (HW, Cout)

    # ---- three dilated 3x3 branches, each folded straight into the output accumulation ----
    bb = bb_ref[...]                                                          # (3, C) f32
    for i, d in enumerate(dils):
        off = dmax - d                                 # single max-dilation pad -> per-d offset
        bacc = jnp.zeros((HW, C), f32)
        for ky in range(3):
            for kx in range(3):
                patch = xp_ref[0, off + ky * d: off + ky * d + H,
                               off + kx * d: off + kx * d + W, :]             # (H, W, C) bf16
                bacc = bacc + jnp.dot(patch.reshape(HW, C), wb_ref[i * 9 + ky * 3 + kx],
                                      preferred_element_type=f32)
        br = jnp.maximum(bacc + bb[i], 0.0)                                   # BN bias + ReLU
        acc = acc + jnp.dot(br.astype(bf16), wo_ref[i + 1], preferred_element_type=f32)

    # ---- output BN bias + pooled-branch (xavg) bias + ReLU ----
    acc = acc + bo_ref[...] + g_ref[0]
    o_ref[...] = jnp.maximum(acc, 0.0).reshape(1, H, W, -1).astype(o_ref.dtype)


def aspp_fused_out(x0_pad, gcontrib, kp, *, H, W, dmax, dils):
    N, Hp, Wp, C = x0_pad.shape
    Cout = kp["b_out"].shape[1]
    kernel = functools.partial(_aspp_fused_kernel, H=H, W=W, dmax=dmax, dils=tuple(dils))
    return pl.pallas_call(
        kernel,
        out_shape=jax.ShapeDtypeStruct((N, H, W, Cout), jnp.float32),
        grid=(N,),
        in_specs=[
            pl.BlockSpec((1, 1, Cout), lambda n: (n, 0, 0)),       # gcontrib (per-batch bias)
            pl.BlockSpec((1, Hp, Wp, C), lambda n: (n, 0, 0, 0)),  # padded x0
            pl.BlockSpec((C, C), lambda n: (0, 0)),                # w_1x1 (folded)
            pl.BlockSpec((1, C), lambda n: (0, 0)),                # b_1x1
            pl.BlockSpec((27, C, C), lambda n: (0, 0, 0)),         # dilated taps (folded)
            pl.BlockSpec((3, C), lambda n: (0, 0)),                # dilated biases
            pl.BlockSpec((4, C, Cout), lambda n: (0, 0, 0)),       # w_out slices (folded)
            pl.BlockSpec((1, Cout), lambda n: (0, 0)),             # b_out
        ],
        out_specs=pl.BlockSpec((1, H, W, Cout), lambda n: (n, 0, 0, 0)),
        compiler_params=pltpu.CompilerParams(dimension_semantics=("parallel",)),
    )(gcontrib, x0_pad, kp["w_1x1"], kp["b_1x1"], kp["wb"], kp["bb"], kp["wo_br"], kp["b_out"])


# ------------------------------ parameters ------------------------------

def _fold_bn(gamma, beta, mean, var, eps=1e-5):
    scale = gamma / jnp.sqrt(var + eps)
    bias = beta - mean * scale
    return scale.astype(jnp.float32), bias.astype(jnp.float32)


def init_params(key, in_chs, aspp_chs, out_chs):
    last_chns = aspp_chs * 5  # 4 branches + avg-pool branch

    def conv_w(k, shape):
        return (0.1 * jax.random.normal(k, shape)).astype(jnp.float32)

    def bn(k, c):
        k1, k2, k3, k4 = jax.random.split(k, 4)
        gamma = 1.0 + 0.1 * jax.random.normal(k1, (c,))
        beta = 0.1 * jax.random.normal(k2, (c,))
        mean = 0.1 * jax.random.normal(k3, (c,))
        var = 1.0 + 0.1 * jnp.abs(jax.random.normal(k4, (c,)))
        return _fold_bn(gamma, beta, mean, var)

    ks = jax.random.split(key, 16)
    p = {}
    p["w_in"] = conv_w(ks[0], (in_chs, aspp_chs))
    p["s_in"], p["b_in"] = bn(ks[1], aspp_chs)
    p["w_1x1"] = conv_w(ks[2], (aspp_chs, aspp_chs))
    p["s_1x1"], p["b_1x1"] = bn(ks[3], aspp_chs)
    p["w_b1"] = conv_w(ks[4], (3, 3, aspp_chs, aspp_chs))
    p["s_b1"], p["b_b1"] = bn(ks[5], aspp_chs)
    p["w_b2"] = conv_w(ks[6], (3, 3, aspp_chs, aspp_chs))
    p["s_b2"], p["b_b2"] = bn(ks[7], aspp_chs)
    p["w_b3"] = conv_w(ks[8], (3, 3, aspp_chs, aspp_chs))
    p["s_b3"], p["b_b3"] = bn(ks[9], aspp_chs)
    p["w_gave"] = conv_w(ks[10], (aspp_chs, aspp_chs))
    p["w_out"] = conv_w(ks[11], (last_chns, out_chs))
    p["s_out"], p["b_out"] = bn(ks[12], out_chs)
    return p


def prepare_kernel_params(p):
    """Fold BN scales into conv weights, cast matmul operands to bf16, stack branch weights."""
    f32, bf16 = jnp.float32, jnp.bfloat16
    C = p["w_in"].shape[1]
    Cout = p["w_out"].shape[1]
    kp = {}
    kp["w_in"] = (p["w_in"] * p["s_in"][None, :]).astype(bf16)            # (Cin, C)
    kp["b_in"] = p["b_in"].reshape(1, C).astype(f32)
    kp["w_1x1"] = (p["w_1x1"] * p["s_1x1"][None, :]).astype(bf16)         # (C, C)
    kp["b_1x1"] = p["b_1x1"].reshape(1, C).astype(f32)

    wb, bb = [], []
    for i in (1, 2, 3):
        w = p[f"w_b{i}"].reshape(9, C, C) * p[f"s_b{i}"][None, None, :]   # fold BN scale
        wb.append(w)
        bb.append(p[f"b_b{i}"])
    kp["wb"] = jnp.concatenate(wb, axis=0).astype(bf16)                   # (27, C, C)
    kp["bb"] = jnp.stack(bb, axis=0).astype(f32)                          # (3, C)

    w_out_f = p["w_out"] * p["s_out"][None, :]                            # (5C, Cout), folded
    kp["wo_avg"] = w_out_f[0:C].astype(f32)                               # pooled branch slice
    kp["wo_br"] = jnp.stack([w_out_f[C:2 * C], w_out_f[2 * C:3 * C],
                             w_out_f[3 * C:4 * C], w_out_f[4 * C:5 * C]], 0).astype(bf16)
    kp["b_out"] = p["b_out"].reshape(1, Cout).astype(f32)
    kp["w_gave"] = p["w_gave"].astype(f32)                                # (C, C)
    return kp


# ------------------------------ forward passes ------------------------------

def aspp_forward(x_nchw, p, dilation=(6, 12, 18)):
    kp = prepare_kernel_params(p)
    x = jnp.transpose(x_nchw, (0, 2, 3, 1)).astype(jnp.float32)           # -> NHWC
    N, H, W, Cin = x.shape
    C = kp["w_1x1"].shape[0]
    dmax = max(dilation)

    # aspp_in: 1x1 conv + folded BN (no activation); x0 stored bf16
    x2d = x.reshape(N * H * W, Cin).astype(jnp.bfloat16)
    x0 = conv1x1_bias_act(x2d, kp["w_in"], kp["b_in"], act=False,
                          out_dtype=jnp.bfloat16).reshape(N, H, W, C)

    # pooled branch -> per-batch bias for the output conv (no spatial broadcast)
    gcontrib = gave_pool_bias(x0, kp["w_gave"], kp["wo_avg"])             # (N, 1, Cout)

    # single zero-pad with the maximum dilation (shared by all three dilated branches)
    x0_pad = jnp.pad(x0, ((0, 0), (dmax, dmax), (dmax, dmax), (0, 0)))

    # fused: x1 + dilated branches + (concat -> dropout[eval] -> aspp_out), no HBM intermediates
    out = aspp_fused_out(x0_pad, gcontrib, kp, H=H, W=W, dmax=dmax, dils=dilation)
    return jnp.transpose(out, (0, 3, 1, 2))                               # -> NCHW


def ref_forward(x_nchw, p, dilation=(6, 12, 18)):
    """Pure-JAX f32 reference (lax conv) for a correctness check."""
    x = jnp.transpose(x_nchw, (0, 2, 3, 1)).astype(jnp.float32)

    def c1(xx, w, s, b, act):
        y = jnp.einsum("nhwc,cd->nhwd", xx, w) * s + b
        return jnp.maximum(y, 0.0) if act else y

    def c3(xx, w, s, b, d):
        y = jax.lax.conv_general_dilated(
            xx, w, (1, 1), [(d, d), (d, d)], rhs_dilation=(d, d),
            dimension_numbers=("NHWC", "HWIO", "NHWC"))
        return jnp.maximum(y * s + b, 0.0)

    x0 = c1(x, p["w_in"], p["s_in"], p["b_in"], False)
    x1 = c1(x0, p["w_1x1"], p["s_1x1"], p["b_1x1"], True)
    b1 = c3(x0, p["w_b1"], p["s_b1"], p["b_b1"], dilation[0])
    b2 = c3(x0, p["w_b2"], p["s_b2"], p["b_b2"], dilation[1])
    b3 = c3(x0, p["w_b3"], p["s_b3"], p["b_b3"], dilation[2])
    m = jnp.mean(jnp.maximum(x0, 0.0), axis=(1, 2))
    g = jnp.maximum(m @ p["w_gave"], 0.0)
    xavg = jnp.broadcast_to(g[:, None, None, :], x0.shape)
    cat = jnp.concatenate([xavg, x1, b1, b2, b3], axis=-1)
    out = c1(cat, p["w_out"], p["s_out"], p["b_out"], True)
    return jnp.transpose(out, (0, 3, 1, 2))


# ------------------------------ main ------------------------------

if __name__ == "__main__":
    key = jax.random.PRNGKey(0)
    k_x, k_p = jax.random.split(key)

    N, in_chs, H, W = 2, 6, 16, 16
    aspp_chs, out_chs = 8, 4

    x = jax.random.normal(k_x, (N, in_chs, H, W), dtype=jnp.float32)  # NCHW, like PyTorch
    params = init_params(k_p, in_chs, aspp_chs, out_chs)

    out = jax.block_until_ready(aspp_forward(x, params))
    ref = jax.block_until_ready(ref_forward(x, params))

    assert out.shape == (N, out_chs, H, W), out.shape
    assert bool(jnp.all(jnp.isfinite(out)))
    # bf16 matmul operands (intentional) vs f32 reference -> slightly looser tolerance
    assert bool(jnp.allclose(out, ref, rtol=5e-2, atol=5e-2)), \
        f"max abs diff {float(jnp.max(jnp.abs(out - ref)))}"

    print("KERNEL_OK")
</pallas_src>

<mosaic_0001>
module attributes {stable_mosaic.version = 11 : i64} {
  func.func @_conv1x1_kernel(%arg0: i32, %arg1: memref<512x6xbf16, #tpu.memory_space<vmem>>, %arg2: memref<6x8xbf16, #tpu.memory_space<vmem>>, %arg3: memref<1x8xf32, #tpu.memory_space<vmem>>, %arg4: memref<512x8xbf16, #tpu.memory_space<vmem>>) attributes {dimension_semantics = [#tpu.dimension_semantics<parallel>], iteration_bounds = array<i64: 1>, scalar_prefetch = 0 : i64, scratch_operands = 0 : i64, tpu.core_type = #tpu.core_type<tc>, window_params = [{transform_indices = @transform_0, window_bounds = array<i64: 512, 6>}, {pipeline_mode = #tpu.pipeline_mode<synchronous>, transform_indices = @transform_1, window_bounds = array<i64: 6, 8>}, {pipeline_mode = #tpu.pipeline_mode<synchronous>, transform_indices = @transform_2, window_bounds = array<i64: 1, 8>}, {transform_indices = @transform_3, window_bounds = array<i64: 512, 8>}]} {
    %c0 = arith.constant 0 : index
    %c0_0 = arith.constant 0 : index
    %0 = vector.load %arg1[%c0, %c0_0] : memref<512x6xbf16, #tpu.memory_space<vmem>>, vector<512x6xbf16>
    %c0_1 = arith.constant 0 : index
    %c0_2 = arith.constant 0 : index
    %1 = vector.load %arg2[%c0_1, %c0_2] : memref<6x8xbf16, #tpu.memory_space<vmem>>, vector<6x8xbf16>
    %cst = arith.constant dense<0.000000e+00> : vector<512x8xf32>
    %2 = tpu.matmul %0, %1, %cst {dimension_numbers = #tpu.dot_dimension_numbers<[1], [0], [0], [1], [0, 0, 1, 1], [], []>} : vector<512x6xbf16>, vector<6x8xbf16>, vector<512x8xf32> -> vector<512x8xf32>
    %c0_3 = arith.constant 0 : index
    %c0_4 = arith.constant 0 : index
    %3 = vector.load %arg3[%c0_3, %c0_4] : memref<1x8xf32, #tpu.memory_space<vmem>>, vector<1x8xf32>
    %4 = vector.broadcast %3 : vector<1x8xf32> to vector<512x8xf32>
    %5 = arith.addf %2, %4 : vector<512x8xf32>
    %6 = arith.truncf %5 : vector<512x8xf32> to vector<512x8xbf16>
    %c0_5 = arith.constant 0 : index
    %c0_6 = arith.constant 0 : index
    %7 = vector.load %arg4[%c0_5, %c0_6] : memref<512x8xbf16, #tpu.memory_space<vmem>>, vector<512x8xbf16>
    tpu.vector_store %arg4[%c0_5, %c0_6], %6 {strides = array<i32>} : memref<512x8xbf16, #tpu.memory_space<vmem>>, vector<512x8xbf16>,
    return
  }
  func.func @transform_0(%arg0: i32) -> (i32, i32) {
    %c0_i32 = arith.constant 0 : i32
    %c0_i32_0 = arith.constant 0 : i32
    return %arg0, %c0_i32 : i32, i32
  }
  func.func @transform_1(%arg0: i32) -> (i32, i32) {
    %c0_i32 = arith.constant 0 : i32
    %c0_i32_0 = arith.constant 0 : i32
    %c0_i32_1 = arith.constant 0 : i32
    return %c0_i32, %c0_i32_0 : i32, i32
  }
  func.func @transform_2(%arg0: i32) -> (i32, i32) {
    %c0_i32 = arith.constant 0 : i32
    %c0_i32_0 = arith.constant 0 : i32
    %c0_i32_1 = arith.constant 0 : i32
    return %c0_i32, %c0_i32_0 : i32, i32
  }
  func.func @transform_3(%arg0: i32) -> (i32, i32) {
    %c0_i32 = arith.constant 0 : i32
    %c0_i32_0 = arith.constant 0 : i32
    return %arg0, %c0_i32 : i32, i32
  }
}

</mosaic_0001>

<bundles_post_ra>
// kernel: tpu_custom_call.1
= control target key start
LH: loop header
LB: loop body
LE: loop exit
PB: predicated region body
PF: predicated region fallthrough
CT: control target
= control target key end

     0   :  { %vm344_vm0 = vcmask 1042432   ;;  %vm247_vm1 = vcmask 48128   ;;  %vm893_vm2 = vcmask 60416   ;;  %s1766_s1 = inlined_call_operand.vmem [shape: bf16[6,8], index: 1, kind: input, shape index: {}]   ;;  %s1767_s0 = inlined_call_operand.vmem [shape: bf16[512,6], index: 0, kind: input, shape index: {}]   ;;  %s1768_s2 = inlined_call_operand.vmem [shape: f32[1,8], index: 2, kind: input, shape index: {}]   ;;  %s1769_s3 = inlined_call_operand.vmem [shape: bf16[512,8], index: 3, kind: output, shape index: {}]  }
   0x1   :  { %v79_v0 = vld [vmem:[%s1766_s1] sm:$0x7]  ;;  %v1260_v4 = vld [vmem:[%s1767_s0 + $0x8] sm:$0xff]   ;;  %v1262_v6 = vld [vmem:[%s1767_s0 + $0x10] sm:$0xff]  }
   0x2   :  { %1256 = vmatprep.subr.msk.bf16.mxu0 %vm344_vm0, %v79_v0  ;;  %1257 = vmatprep.subr.msk.bf16.mxu1 %vm344_vm0, %v79_v0  ;;  %v346_v1 = vsel %vm344_vm0, %v79_v0, 0  ;;  %v1258_v2 = vld [vmem:[%s1767_s0] sm:$0xff]   ;;  %v1261_v5 = vld [vmem:[%s1767_s0 + $0x88] sm:$0xff]   ;;  %v1263_v7 = vld [vmem:[%s1767_s0 + $0x90] sm:$0xff]  }
   0x3   :  { %1189 = vmatpush3.bf16.msra.mxu0 %v346_v1  ;;  %1255 = vmatpush3.bf16.msra.mxu1 %v346_v1  ;;  %v1259_v3 = vld [vmem:[%s1767_s0 + $0x80] sm:$0xff]   ;;  %v1264_v8 = vld [vmem:[%s1767_s0 + $0x18] sm:$0xff]   ;;  %v1268_v12 = vld [vmem:[%s1767_s0 + $0x28] sm:$0xff]  }
   0x4   :  { %1190 = vmatprep.mubr.msk.bf16.mxu0 %vm247_vm1, %v1258_v2  ;;  %1222 = vmatprep.mubr.msk.bf16.mxu1 %vm247_vm1, %v1259_v3  ;;  %v1265_v9 = vld [vmem:[%s1767_s0 + $0x98] sm:$0xff]   ;;  %v1266_v10 = vld [vmem:[%s1767_s0 + $0x20] sm:$0xff]   ;;  %v1269_v13 = vld [vmem:[%s1767_s0 + $0xa8] sm:$0xff]  }
   0x5   :  { %v1267_v11 = vld [vmem:[%s1767_s0 + $0xa0] sm:$0xff]   ;;  %v1270_v14 = vld [vmem:[%s1767_s0 + $0x30] sm:$0xff]   ;;  %v1272_v16 = vld [vmem:[%s1767_s0 + $0x38] sm:$0xff]  }
   0x6   :  { %1191 = vmatmul.mubr.msk.bf16.vlgmr.msra.gmra.mxu0 %vm247_vm1, %v1260_v4  ;;  %1223 = vmatmul.mubr.msk.bf16.vlgmr.msra.gmra.mxu1 %vm247_vm1, %v1261_v5  ;;  %v1271_v15 = vld [vmem:[%s1767_s0 + $0xb0] sm:$0xff]   ;;  %v1273_v17 = vld [vmem:[%s1767_s0 + $0xb8] sm:$0xff]   ;;  %v1274_v18 = vld [vmem:[%s1767_s0 + $0x40] sm:$0xff]  }
   0x7   :  { %1194 = vmatprep.mubr.msk.bf16.mxu0 %vm247_vm1, %v1262_v6  ;;  %1226 = vmatprep.mubr.msk.bf16.mxu1 %vm247_vm1, %v1263_v7  ;;  %v1275_v19 = vld [vmem:[%s1767_s0 + $0xc0] sm:$0xff]   ;;  %v1276_v20 = vld [vmem:[%s1767_s0 + $0x48] sm:$0xff]   ;;  %v1278_v22 = vld [vmem:[%s1767_s0 + $0x50] sm:$0xff]  }
   0x8   :  { %v1277_v21 = vld [vmem:[%s1767_s0 + $0xc8] sm:$0xff]   ;;  %v1279_v23 = vld [vmem:[%s1767_s0 + $0xd0] sm:$0xff]   ;;  %v1280_v24 = vld [vmem:[%s1767_s0 + $0x58] sm:$0xff]  }
   0x9   :  { %v1281_v25 = vld [vmem:[%s1767_s0 + $0xd8] sm:$0xff]   ;;  %v1282_v26 = vld [vmem:[%s1767_s0 + $0x60] sm:$0xff]   ;;  %v1284_v28 = vld [vmem:[%s1767_s0 + $0x68] sm:$0xff]  }
   0xa   :  { %v1283_v27 = vld [vmem:[%s1767_s0 + $0xe0] sm:$0xff]   ;;  %v1285_v29 = vld [vmem:[%s1767_s0 + $0xe8] sm:$0xff]   ;;  %v1286_v30 = vld [vmem:[%s1767_s0 + $0x70] sm:$0xff]  }
   0xb   :  { %v1287_v31 = vld [vmem:[%s1767_s0 + $0xf0] sm:$0xff]   ;;  %v1288_v32 = vld [vmem:[%s1767_s0 + $0x78] sm:$0xff]   ;;  %v1444_v34 = vld [vmem:[%s1768_s2] ss:$0 sm:$0xff] }
   0xc   :  { %v1289_v33 = vld [vmem:[%s1767_s0 + $0xf8] sm:$0xff]  }
   0xe   :  { %1195 = vmatmul.mubr.msk.bf16.gmra.mxu0 %vm247_vm1, %v1264_v8  ;;  %1227 = vmatmul.mubr.msk.bf16.gmra.mxu1 %vm247_vm1, %v1265_v9 }
   0xf   :  { %1198 = vmatprep.mubr.msk.bf16.mxu0 %vm247_vm1, %v1266_v10  ;;  %1230 = vmatprep.mubr.msk.bf16.mxu1 %vm247_vm1, %v1267_v11 }
  0x16   :  { %1199 = vmatmul.mubr.msk.bf16.gmra.mxu0 %vm247_vm1, %v1268_v12  ;;  %1231 = vmatmul.mubr.msk.bf16.gmra.mxu1 %vm247_vm1, %v1269_v13 }
  0x17   :  { %1202 = vmatprep.mubr.msk.bf16.mxu0 %vm247_vm1, %v1270_v14  ;;  %1234 = vmatprep.mubr.msk.bf16.mxu1 %vm247_vm1, %v1271_v15 }
  0x1e   :  { %1203 = vmatmul.mubr.msk.bf16.gmra.mxu0 %vm247_vm1, %v1272_v16  ;;  %1235 = vmatmul.mubr.msk.bf16.gmra.mxu1 %vm247_vm1, %v1273_v17 }
  0x1f   :  { %1206 = vmatprep.mubr.msk.bf16.mxu0 %vm247_vm1, %v1274_v18  ;;  %1238 = vmatprep.mubr.msk.bf16.mxu1 %vm247_vm1, %v1275_v19 }
  0x26   :  { %1207 = vmatmul.mubr.msk.bf16.gmra.mxu0 %vm247_vm1, %v1276_v20  ;;  %1239 = vmatmul.mubr.msk.bf16.gmra.mxu1 %vm247_vm1, %v1277_v21 }
  0x27   :  { %1210 = vmatprep.mubr.msk.bf16.mxu0 %vm247_vm1, %v1278_v22  ;;  %1242 = vmatprep.mubr.msk.bf16.mxu1 %vm247_vm1, %v1279_v23 }
  0x2e   :  { %1211 = vmatmul.mubr.msk.bf16.gmra.mxu0 %vm247_vm1, %v1280_v24  ;;  %1243 = vmatmul.mubr.msk.bf16.gmra.mxu1 %vm247_vm1, %v1281_v25 }
  0x2f   :  { %1214 = vmatprep.mubr.msk.bf16.mxu0 %vm247_vm1, %v1282_v26  ;;  %1246 = vmatprep.mubr.msk.bf16.mxu1 %vm247_vm1, %v1283_v27 }
  0x36   :  { %1215 = vmatmul.mubr.msk.bf16.gmra.mxu0 %vm247_vm1, %v1284_v28  ;;  %1247 = vmatmul.mubr.msk.bf16.gmra.mxu1 %vm247_vm1, %v1285_v29 }
  0x37   :  { %1218 = vmatprep.mubr.msk.bf16.mxu0 %vm247_vm1, %v1286_v30  ;;  %1250 = vmatprep.mubr.msk.bf16.mxu1 %vm247_vm1, %v1287_v31 }
  0x3e   :  { %1219 = vmatmul.mubr.msk.bf16.gmra.mxu0 %vm247_vm1, %v1288_v32  ;;  %1251 = vmatmul.mubr.msk.bf16.gmra.mxu1 %vm247_vm1, %v1289_v33 }
  0xc6   :  { %v1192_v35 = vpop.f32.mrf.mxu0  ;;  %v1224_v37 = vpop.f32.mrf.mxu1 }
  0xc7   :  { %v391_v36 = vadd.f32 %v1192_v35, %v1444_v34  ;;  %v519_v38 = vadd.f32 %v1224_v37, %v1444_v34 }
  0xc8   :  { %v382_v39 = vpop.f32.mrf.mxu0  ;;  %v510_v42 = vpop.f32.mrf.mxu1 }
  0xc9   :  { %v1093_v40 = vpack.c.bf16 %v391_v36, %v391_v36  ;;  %v383_v41 = vadd.f32 %v1444_v34, %v382_v39  ;;  %v1125_v43 = vpack.c.bf16 %v519_v38, %v519_v38  ;;  %v511_v44 = vadd.f32 %v1444_v34, %v510_v42 }
  0xca   :  { %v1193_v45 = vpop.f32.mrf.mxu0  ;;  %v1225_v48 = vpop.f32.mrf.mxu1 }
  0xcb   :  { %896 = vst.msk [vmem:[%s1769_s3 + $0x8] sm:$0xf] %vm893_vm2, %v1093_v40  ;;  %v1091_v46 = vpack.c.bf16 %v383_v41, %v383_v41  ;;  %v394_v47 = vadd.f32 %v1193_v45, %v1444_v34  ;;  %928 = vst.msk [vmem:[%s1769_s3 + $0x88] sm:$0xf] %vm893_vm2, %v1125_v43  ;;  %v1123_v49 = vpack.c.bf16 %v511_v44, %v511_v44 }
  0xcc   :  { %v522_v50 = vadd.f32 %v1225_v48, %v1444_v34  ;;  %v385_v51 = vpop.f32.mrf.mxu0  ;;  %v513_v54 = vpop.f32.mrf.mxu1 }
  0xcd   :  { %894 = vst.msk [vmem:[%s1769_s3] sm:$0xf] %vm893_vm2, %v1091_v46  ;;  %v1094_v52 = vpack.c.bf16 %v394_v47, %v394_v47  ;;  %v386_v53 = vadd.f32 %v1444_v34, %v385_v51  ;;  %926 = vst.msk [vmem:[%s1769_s3 + $0x80] sm:$0xf] %vm893_vm2, %v1123_v49  ;;  %v514_v56 = vadd.f32 %v1444_v34, %v513_v54 }
  0xce   :  { %v1126_v55 = vpack.c.bf16 %v522_v50, %v522_v50  ;;  %v1196_v57 = vpop.f32.mrf.mxu0  ;;  %v1228_v60 = vpop.f32.mrf.mxu1 }
  0xcf   :  { %897 = vst.msk [vmem:[%s1769_s3 + $0xc] sm:$0xf] %vm893_vm2, %v1094_v52  ;;  %v1092_v58 = vpack.c.bf16 %v386_v53, %v386_v53  ;;  %v407_v59 = vadd.f32 %v1196_v57, %v1444_v34  ;;  %v1124_v61 = vpack.c.bf16 %v514_v56, %v514_v56  ;;  %v535_v62 = vadd.f32 %v1228_v60, %v1444_v34 }
  0xd0   :  { %929 = vst.msk [vmem:[%s1769_s3 + $0x8c] sm:$0xf] %vm893_vm2, %v1126_v55  ;;  %v398_v63 = vpop.f32.mrf.mxu0  ;;  %v526_v2 = vpop.f32.mrf.mxu1 }
  0xd1   :  { %895 = vst.msk [vmem:[%s1769_s3 + $0x4] sm:$0xf] %vm893_vm2, %v1092_v58  ;;  %v1097_v0 = vpack.c.bf16 %v407_v59, %v407_v59  ;;  %v399_v1 = vadd.f32 %v1444_v34, %v398_v63  ;;  %927 = vst.msk [vmem:[%s1769_s3 + $0x84] sm:$0xf] %vm893_vm2, %v1124_v61  ;;  %v1129_v3 = vpack.c.bf16 %v535_v62, %v535_v62 }
  0xd2   :  { %v527_v4 = vadd.f32 %v1444_v34, %v526_v2  ;;  %v1197_v5 = vpop.f32.mrf.mxu0  ;;  %v1229_v8 = vpop.f32.mrf.mxu1 }
  0xd3   :  { %900 = vst.msk [vmem:[%s1769_s3 + $0x18] sm:$0xf] %vm893_vm2, %v1097_v0  ;;  %v1095_v6 = vpack.c.bf16 %v399_v1, %v399_v1  ;;  %v410_v7 = vadd.f32 %v1197_v5, %v1444_v34  ;;  %932 = vst.msk [vmem:[%s1769_s3 + $0x98] sm:$0xf] %vm893_vm2, %v1129_v3  ;;  %v538_v10 = vadd.f32 %v1229_v8, %v1444_v34 }
  0xd4   :  { %v1127_v9 = vpack.c.bf16 %v527_v4, %v527_v4  ;;  %v401_v11 = vpop.f32.mrf.mxu0  ;;  %v529_v14 = vpop.f32.mrf.mxu1 }
  0xd5   :  { %898 = vst.msk [vmem:[%s1769_s3 + $0x10] sm:$0xf] %vm893_vm2, %v1095_v6  ;;  %v1098_v12 = vpack.c.bf16 %v410_v7, %v410_v7  ;;  %v402_v13 = vadd.f32 %v1444_v34, %v401_v11  ;;  %v1130_v15 = vpack.c.bf16 %v538_v10, %v538_v10  ;;  %v530_v16 = vadd.f32 %v1444_v34, %v529_v14 }
  0xd6   :  { %930 = vst.msk [vmem:[%s1769_s3 + $0x90] sm:$0xf] %vm893_vm2, %v1127_v9  ;;  %v1200_v17 = vpop.f32.mrf.mxu0  ;;  %v1232_v20 = vpop.f32.mrf.mxu1 }
  0xd7   :  { %901 = vst.msk [vmem:[%s1769_s3 + $0x1c] sm:$0xf] %vm893_vm2, %v1098_v12  ;;  %v1096_v18 = vpack.c.bf16 %v402_v13, %v402_v13  ;;  %v423_v19 = vadd.f32 %v1200_v17, %v1444_v34  ;;  %933 = vst.msk [vmem:[%s1769_s3 + $0x9c] sm:$0xf] %vm893_vm2, %v1130_v15  ;;  %v1128_v21 = vpack.c.bf16 %v530_v16, %v530_v16 }
  0xd8   :  { %v551_v22 = vadd.f32 %v1232_v20, %v1444_v34  ;;  %v414_v23 = vpop.f32.mrf.mxu0  ;;  %v542_v26 = vpop.f32.mrf.mxu1 }
  0xd9   :  { %899 = vst.msk [vmem:[%s1769_s3 + $0x14] sm:$0xf] %vm893_vm2, %v1096_v18  ;;  %v1101_v24 = vpack.c.bf16 %v423_v19, %v423_v19  ;;  %v415_v25 = vadd.f32 %v1444_v34, %v414_v23  ;;  %931 = vst.msk [vmem:[%s1769_s3 + $0x94] sm:$0xf] %vm893_vm2, %v1128_v21  ;;  %v543_v28 = vadd.f32 %v1444_v34, %v542_v26 }
  0xda   :  { %v1133_v27 = vpack.c.bf16 %v551_v22, %v551_v22  ;;  %v1201_v29 = vpop.f32.mrf.mxu0  ;;  %v1233_v32 = vpop.f32.mrf.mxu1 }
  0xdb   :  { %904 = vst.msk [vmem:[%s1769_s3 + $0x28] sm:$0xf] %vm893_vm2, %v1101_v24  ;;  %v1099_v30 = vpack.c.bf16 %v415_v25, %v415_v25  ;;  %v426_v31 = vadd.f32 %v1201_v29, %v1444_v34  ;;  %v1131_v33 = vpack.c.bf16 %v543_v28, %v543_v28  ;;  %v554_v35 = vadd.f32 %v1233_v32, %v1444_v34 }
  0xdc   :  { %936 = vst.msk [vmem:[%s1769_s3 + $0xa8] sm:$0xf] %vm893_vm2, %v1133_v27  ;;  %v417_v36 = vpop.f32.mrf.mxu0  ;;  %v545_v39 = vpop.f32.mrf.mxu1 }
  0xdd   :  { %902 = vst.msk [vmem:[%s1769_s3 + $0x20] sm:$0xf] %vm893_vm2, %v1099_v30  ;;  %v1102_v37 = vpack.c.bf16 %v426_v31, %v426_v31  ;;  %v418_v38 = vadd.f32 %v1444_v34, %v417_v36  ;;  %934 = vst.msk [vmem:[%s1769_s3 + $0xa0] sm:$0xf] %vm893_vm2, %v1131_v33  ;;  %v1134_v40 = vpack.c.bf16 %v554_v35, %v554_v35 }
  0xde   :  { %v546_v41 = vadd.f32 %v1444_v34, %v545_v39  ;;  %v1204_v42 = vpop.f32.mrf.mxu0  ;;  %v1236_v45 = vpop.f32.mrf.mxu1 }
  0xdf   :  { %905 = vst.msk [vmem:[%s1769_s3 + $0x2c] sm:$0xf] %vm893_vm2, %v1102_v37  ;;  %v1100_v43 = vpack.c.bf16 %v418_v38, %v418_v38  ;;  %v439_v44 = vadd.f32 %v1204_v42, %v1444_v34  ;;  %937 = vst.msk [vmem:[%s1769_s3 + $0xac] sm:$0xf] %vm893_vm2, %v1134_v40  ;;  %v567_v47 = vadd.f32 %v1236_v45, %v1444_v34 }
  0xe0   :  { %v1132_v46 = vpack.c.bf16 %v546_v41, %v546_v41  ;;  %v430_v48 = vpop.f32.mrf.mxu0  ;;  %v558_v51 = vpop.f32.mrf.mxu1 }
  0xe1   :  { %903 = vst.msk [vmem:[%s1769_s3 + $0x24] sm:$0xf] %vm893_vm2, %v1100_v43  ;;  %v1105_v49 = vpack.c.bf16 %v439_v44, %v439_v44  ;;  %v431_v50 = vadd.f32 %v1444_v34, %v430_v48  ;;  %v1137_v52 = vpack.c.bf16 %v567_v47, %v567_v47  ;;  %v559_v53 = vadd.f32 %v1444_v34, %v558_v51 }
  0xe2   :  { %935 = vst.msk [vmem:[%s1769_s3 + $0xa4] sm:$0xf] %vm893_vm2, %v1132_v46  ;;  %v1205_v54 = vpop.f32.mrf.mxu0  ;;  %v1237_v57 = vpop.f32.mrf.mxu1 }
  0xe3   :  { %908 = vst.msk [vmem:[%s1769_s3 + $0x38] sm:$0xf] %vm893_vm2, %v1105_v49  ;;  %v1103_v55 = vpack.c.bf16 %v431_v50, %v431_v50  ;;  %v442_v56 = vadd.f32 %v1205_v54, %v1444_v34  ;;  %940 = vst.msk [vmem:[%s1769_s3 + $0xb8] sm:$0xf] %vm893_vm2, %v1137_v52  ;;  %v1135_v58 = vpack.c.bf16 %v559_v53, %v559_v53 }
  0xe4   :  { %v570_v59 = vadd.f32 %v1237_v57, %v1444_v34  ;;  %v433_v60 = vpop.f32.mrf.mxu0  ;;  %v561_v63 = vpop.f32.mrf.mxu1 }
  0xe5   :  { %906 = vst.msk [vmem:[%s1769_s3 + $0x30] sm:$0xf] %vm893_vm2, %v1103_v55  ;;  %v1106_v61 = vpack.c.bf16 %v442_v56, %v442_v56  ;;  %v434_v62 = vadd.f32 %v1444_v34, %v433_v60  ;;  %938 = vst.msk [vmem:[%s1769_s3 + $0xb0] sm:$0xf] %vm893_vm2, %v1135_v58  ;;  %v562_v1 = vadd.f32 %v1444_v34, %v561_v63 }
  0xe6   :  { %v1138_v0 = vpack.c.bf16 %v570_v59, %v570_v59  ;;  %v1208_v2 = vpop.f32.mrf.mxu0  ;;  %v1240_v5 = vpop.f32.mrf.mxu1 }
  0xe7   :  { %909 = vst.msk [vmem:[%s1769_s3 + $0x3c] sm:$0xf] %vm893_vm2, %v1106_v61  ;;  %v1104_v3 = vpack.c.bf16 %v434_v62, %v434_v62  ;;  %v455_v4 = vadd.f32 %v1208_v2, %v1444_v34  ;;  %v1136_v6 = vpack.c.bf16 %v562_v1, %v562_v1  ;;  %v583_v7 = vadd.f32 %v1240_v5, %v1444_v34 }
  0xe8   :  { %941 = vst.msk [vmem:[%s1769_s3 + $0xbc] sm:$0xf] %vm893_vm2, %v1138_v0  ;;  %v446_v8 = vpop.f32.mrf.mxu0  ;;  %v574_v11 = vpop.f32.mrf.mxu1 }
  0xe9   :  { %907 = vst.msk [vmem:[%s1769_s3 + $0x34] sm:$0xf] %vm893_vm2, %v1104_v3  ;;  %v1109_v9 = vpack.c.bf16 %v455_v4, %v455_v4  ;;  %v447_v10 = vadd.f32 %v1444_v34, %v446_v8  ;;  %939 = vst.msk [vmem:[%s1769_s3 + $0xb4] sm:$0xf] %vm893_vm2, %v1136_v6  ;;  %v1141_v12 = vpack.c.bf16 %v583_v7, %v583_v7 }
  0xea   :  { %v575_v13 = vadd.f32 %v1444_v34, %v574_v11  ;;  %v1209_v14 = vpop.f32.mrf.mxu0  ;;  %v1241_v17 = vpop.f32.mrf.mxu1 }
  0xeb   :  { %912 = vst.msk [vmem:[%s1769_s3 + $0x48] sm:$0xf] %vm893_vm2, %v1109_v9  ;;  %v1107_v15 = vpack.c.bf16 %v447_v10, %v447_v10  ;;  %v458_v16 = vadd.f32 %v1209_v14, %v1444_v34  ;;  %944 = vst.msk [vmem:[%s1769_s3 + $0xc8] sm:$0xf] %vm893_vm2, %v1141_v12  ;;  %v586_v19 = vadd.f32 %v1241_v17, %v1444_v34 }
  0xec   :  { %v1139_v18 = vpack.c.bf16 %v575_v13, %v575_v13  ;;  %v449_v20 = vpop.f32.mrf.mxu0  ;;  %v577_v23 = vpop.f32.mrf.mxu1 }
  0xed   :  { %910 = vst.msk [vmem:[%s1769_s3 + $0x40] sm:$0xf] %vm893_vm2, %v1107_v15  ;;  %v1110_v21 = vpack.c.bf16 %v458_v16, %v458_v16  ;;  %v450_v22 = vadd.f32 %v1444_v34, %v449_v20  ;;  %v1142_v24 = vpack.c.bf16 %v586_v19, %v586_v19  ;;  %v578_v25 = vadd.f32 %v1444_v34, %v577_v23 }
  0xee   :  { %942 = vst.msk [vmem:[%s1769_s3 + $0xc0] sm:$0xf] %vm893_vm2, %v1139_v18  ;;  %v1212_v26 = vpop.f32.mrf.mxu0  ;;  %v1244_v29 = vpop.f32.mrf.mxu1 }
  0xef   :  { %913 = vst.msk [vmem:[%s1769_s3 + $0x4c] sm:$0xf] %vm893_vm2, %v1110_v21  ;;  %v1108_v27 = vpack.c.bf16 %v450_v22, %v450_v22  ;;  %v471_v28 = vadd.f32 %v1212_v26, %v1444_v34  ;;  %945 = vst.msk [vmem:[%s1769_s3 + $0xcc] sm:$0xf] %vm893_vm2, %v1142_v24  ;;  %v1140_v30 = vpack.c.bf16 %v578_v25, %v578_v25 }
  0xf0   :  { %v599_v31 = vadd.f32 %v1244_v29, %v1444_v34  ;;  %v462_v32 = vpop.f32.mrf.mxu0  ;;  %v590_v36 = vpop.f32.mrf.mxu1 }
  0xf1   :  { %911 = vst.msk [vmem:[%s1769_s3 + $0x44] sm:$0xf] %vm893_vm2, %v1108_v27  ;;  %v1113_v33 = vpack.c.bf16 %v471_v28, %v471_v28  ;;  %v463_v35 = vadd.f32 %v1444_v34, %v462_v32  ;;  %943 = vst.msk [vmem:[%s1769_s3 + $0xc4] sm:$0xf] %vm893_vm2, %v1140_v30  ;;  %v591_v38 = vadd.f32 %v1444_v34, %v590_v36 }
  0xf2   :  { %v1145_v37 = vpack.c.bf16 %v599_v31, %v599_v31  ;;  %v1213_v39 = vpop.f32.mrf.mxu0  ;;  %v1245_v42 = vpop.f32.mrf.mxu1 }
  0xf3   :  { %916 = vst.msk [vmem:[%s1769_s3 + $0x58] sm:$0xf] %vm893_vm2, %v1113_v33  ;;  %v1111_v40 = vpack.c.bf16 %v463_v35, %v463_v35  ;;  %v474_v41 = vadd.f32 %v1213_v39, %v1444_v34  ;;  %v1143_v43 = vpack.c.bf16 %v591_v38, %v591_v38  ;;  %v602_v44 = vadd.f32 %v1245_v42, %v1444_v34 }
  0xf4   :  { %948 = vst.msk [vmem:[%s1769_s3 + $0xd8] sm:$0xf] %vm893_vm2, %v1145_v37  ;;  %v465_v45 = vpop.f32.mrf.mxu0  ;;  %v593_v48 = vpop.f32.mrf.mxu1 }
  0xf5   :  { %914 = vst.msk [vmem:[%s1769_s3 + $0x50] sm:$0xf] %vm893_vm2, %v1111_v40  ;;  %v1114_v46 = vpack.c.bf16 %v474_v41, %v474_v41  ;;  %v466_v47 = vadd.f32 %v1444_v34, %v465_v45  ;;  %946 = vst.msk [vmem:[%s1769_s3 + $0xd0] sm:$0xf] %vm893_vm2, %v1143_v43  ;;  %v1146_v49 = vpack.c.bf16 %v602_v44, %v602_v44 }
  0xf6   :  { %v594_v50 = vadd.f32 %v1444_v34, %v593_v48  ;;  %v1216_v51 = vpop.f32.mrf.mxu0  ;;  %v1248_v54 = vpop.f32.mrf.mxu1 }
  0xf7   :  { %917 = vst.msk [vmem:[%s1769_s3 + $0x5c] sm:$0xf] %vm893_vm2, %v1114_v46  ;;  %v1112_v52 = vpack.c.bf16 %v466_v47, %v466_v47  ;;  %v487_v53 = vadd.f32 %v1216_v51, %v1444_v34  ;;  %949 = vst.msk [vmem:[%s1769_s3 + $0xdc] sm:$0xf] %vm893_vm2, %v1146_v49  ;;  %v615_v56 = vadd.f32 %v1248_v54, %v1444_v34 }
  0xf8   :  { %v1144_v55 = vpack.c.bf16 %v594_v50, %v594_v50  ;;  %v478_v57 = vpop.f32.mrf.mxu0  ;;  %v606_v60 = vpop.f32.mrf.mxu1 }
  0xf9   :  { %915 = vst.msk [vmem:[%s1769_s3 + $0x54] sm:$0xf] %vm893_vm2, %v1112_v52  ;;  %v1117_v58 = vpack.c.bf16 %v487_v53, %v487_v53  ;;  %v479_v59 = vadd.f32 %v1444_v34, %v478_v57  ;;  %v1149_v61 = vpack.c.bf16 %v615_v56, %v615_v56  ;;  %v607_v62 = vadd.f32 %v1444_v34, %v606_v60 }
  0xfa   :  { %947 = vst.msk [vmem:[%s1769_s3 + $0xd4] sm:$0xf] %vm893_vm2, %v1144_v55  ;;  %v1217_v63 = vpop.f32.mrf.mxu0  ;;  %v1249_v2 = vpop.f32.mrf.mxu1 }
  0xfb   :  { %920 = vst.msk [vmem:[%s1769_s3 + $0x68] sm:$0xf] %vm893_vm2, %v1117_v58  ;;  %v1115_v0 = vpack.c.bf16 %v479_v59, %v479_v59  ;;  %v490_v1 = vadd.f32 %v1217_v63, %v1444_v34  ;;  %952 = vst.msk [vmem:[%s1769_s3 + $0xe8] sm:$0xf] %vm893_vm2, %v1149_v61  ;;  %v1147_v3 = vpack.c.bf16 %v607_v62, %v607_v62 }
  0xfc   :  { %v618_v4 = vadd.f32 %v1249_v2, %v1444_v34  ;;  %v481_v5 = vpop.f32.mrf.mxu0  ;;  %v609_v8 = vpop.f32.mrf.mxu1 }
  0xfd   :  { %918 = vst.msk [vmem:[%s1769_s3 + $0x60] sm:$0xf] %vm893_vm2, %v1115_v0  ;;  %v1118_v6 = vpack.c.bf16 %v490_v1, %v490_v1  ;;  %v482_v7 = vadd.f32 %v1444_v34, %v481_v5  ;;  %950 = vst.msk [vmem:[%s1769_s3 + $0xe0] sm:$0xf] %vm893_vm2, %v1147_v3  ;;  %v610_v10 = vadd.f32 %v1444_v34, %v609_v8 }
  0xfe   :  { %v1150_v9 = vpack.c.bf16 %v618_v4, %v618_v4  ;;  %v1220_v11 = vpop.f32.mrf.mxu0  ;;  %v1252_v14 = vpop.f32.mrf.mxu1 }
  0xff   :  { %921 = vst.msk [vmem:[%s1769_s3 + $0x6c] sm:$0xf] %vm893_vm2, %v1118_v6  ;;  %v1116_v12 = vpack.c.bf16 %v482_v7, %v482_v7  ;;  %v503_v13 = vadd.f32 %v1220_v11, %v1444_v34  ;;  %v1148_v15 = vpack.c.bf16 %v610_v10, %v610_v10  ;;  %v631_v16 = vadd.f32 %v1252_v14, %v1444_v34 }
 0x100   :  { %953 = vst.msk [vmem:[%s1769_s3 + $0xec] sm:$0xf] %vm893_vm2, %v1150_v9  ;;  %v494_v17 = vpop.f32.mrf.mxu0  ;;  %v622_v20 = vpop.f32.mrf.mxu1 }
 0x101   :  { %919 = vst.msk [vmem:[%s1769_s3 + $0x64] sm:$0xf] %vm893_vm2, %v1116_v12  ;;  %v1121_v18 = vpack.c.bf16 %v503_v13, %v503_v13  ;;  %v495_v19 = vadd.f32 %v1444_v34, %v494_v17  ;;  %951 = vst.msk [vmem:[%s1769_s3 + $0xe4] sm:$0xf] %vm893_vm2, %v1148_v15  ;;  %v1153_v21 = vpack.c.bf16 %v631_v16, %v631_v16 }
 0x102   :  { %v623_v22 = vadd.f32 %v1444_v34, %v622_v20  ;;  %v1221_v23 = vpop.f32.mrf.mxu0  ;;  %v1253_v26 = vpop.f32.mrf.mxu1 }
 0x103   :  { %924 = vst.msk [vmem:[%s1769_s3 + $0x78] sm:$0xf] %vm893_vm2, %v1121_v18  ;;  %v1119_v24 = vpack.c.bf16 %v495_v19, %v495_v19  ;;  %v506_v25 = vadd.f32 %v1221_v23, %v1444_v34  ;;  %956 = vst.msk [vmem:[%s1769_s3 + $0xf8] sm:$0xf] %vm893_vm2, %v1153_v21  ;;  %v634_v28 = vadd.f32 %v1253_v26, %v1444_v34 }
 0x104   :  { %v1151_v27 = vpack.c.bf16 %v623_v22, %v623_v22  ;;  %v497_v29 = vpop.f32.mrf.mxu0  ;;  %v625_v32 = vpop.f32.mrf.mxu1 }
 0x105   :  { %922 = vst.msk [vmem:[%s1769_s3 + $0x70] sm:$0xf] %vm893_vm2, %v1119_v24  ;;  %v1122_v30 = vpack.c.bf16 %v506_v25, %v506_v25  ;;  %v498_v31 = vadd.f32 %v1444_v34, %v497_v29  ;;  %v1154_v33 = vpack.c.bf16 %v634_v28, %v634_v28  ;;  %v626_v35 = vadd.f32 %v1444_v34, %v625_v32 }
 0x106   :  { %954 = vst.msk [vmem:[%s1769_s3 + $0xf0] sm:$0xf] %vm893_vm2, %v1151_v27 }
 0x107   :  { %925 = vst.msk [vmem:[%s1769_s3 + $0x7c] sm:$0xf] %vm893_vm2, %v1122_v30  ;;  %v1120_v36 = vpack.c.bf16 %v498_v31, %v498_v31  ;;  %957 = vst.msk [vmem:[%s1769_s3 + $0xfc] sm:$0xf] %vm893_vm2, %v1154_v33  ;;  %v1152_v37 = vpack.c.bf16 %v626_v35, %v626_v35 }
 0x109   :  { %923 = vst.msk [vmem:[%s1769_s3 + $0x74] sm:$0xf] %vm893_vm2, %v1120_v36  ;;  %955 = vst.msk [vmem:[%s1769_s3 + $0xf4] sm:$0xf] %vm893_vm2, %v1152_v37 }

</bundles_post_ra>
